<compile_context>
chip_gen: v7x
topology: tpu7x:2x2x1
jax: 0.10.0
libtpu: 0.0.40
codegen_flags: <defaults>
</compile_context>

<pallas_src>
import math
import functools

import jax
import jax.numpy as jnp
from jax.experimental import pallas as pl
from jax.experimental.pallas import tpu as pltpu


def _self_attention_kernel(xt_ref, wqkv_t_ref, wo_t_ref, bo_ref, bias_ref,
                           ot_ref, yt_ref,
                           *, num_heads, head_size, scale, compute_dtype):
    """Single invocation over ALL tokens (batch*seq merged).

    xt_ref     : (E, N)   transposed tokens, N = batch*seq, compute dtype
    wqkv_t_ref : (3E, E)  transposed fused QKV weight (no bias), compute dtype
    wo_t_ref   : (E, E)   TRANSPOSED output projection weight, compute dtype
    bo_ref     : (E, 1)   output projection bias, f32
    bias_ref   : (N, N)   additive block-diagonal causal mask bias (0 / -1e30), f32
    ot_ref     : (E, N)   transposed output, f32
    yt_ref     : (E, N)   f32 VMEM scratch holding per-head y^T slabs
    """
    emb = num_heads * head_size
    cdt = compute_dtype

    # --- fused QKV projection: ONE MXU matmul over all tokens, f32 accum ---
    qkv_t = jnp.dot(wqkv_t_ref[...], xt_ref[...],
                    preferred_element_type=jnp.float32)              # (3E, N) f32

    bias = bias_ref[...]                                             # (N, N) f32

    # --- per-head attention; slices taken on the f32 result (tile-aligned),
    #     cast to the MXU operand dtype only AFTER slicing -----------------
    for h in range(num_heads):
        lo = h * head_size
        hi = lo + head_size
        q_t = (qkv_t[0 * emb + lo:0 * emb + hi, :] * scale).astype(cdt)  # (D, N)
        k_t = qkv_t[1 * emb + lo:1 * emb + hi, :].astype(cdt)            # (D, N)
        v_t = qkv_t[2 * emb + lo:2 * emb + hi, :].astype(cdt)            # (D, N)

        # scores[q, k] = sum_d q_t[d, q] * k_t[d, k]   (no explicit transpose)
        scores = jax.lax.dot_general(
            q_t, k_t, (((0,), (0,)), ((), ())),
            preferred_element_type=jnp.float32)                      # (N, N) f32
        scores = scores + bias                                       # causal mask

        # numerically-stable softmax, kept in f32 (v5e has no bf16 VPU/EUP)
        m = jnp.max(scores, axis=-1, keepdims=True)
        p = jnp.exp(scores - m)
        denom = jnp.sum(p, axis=-1, keepdims=True)
        p = p * pl.reciprocal(denom, approx=True)                    # EUP vrcp

        # y_h^T[d, q] = sum_k v_t[d, k] * p[q, k]
        y_ht = jax.lax.dot_general(
            v_t, p.astype(cdt), (((1,), (1,)), ((), ())),
            preferred_element_type=jnp.float32)                      # (D, N) f32

        # Assemble transposed per-head outputs into an (E, N) f32 scratch at
        # sublane offset h*D (f32-aligned) -> no lane-axis concat, no relayout.
        yt_ref[lo:hi, :] = y_ht

    # --- single output projection matmul over all heads (K = E, not H*K=D) ---
    # out^T = Wo^T @ y^T + b^T ; dropout layers are identity in eval mode.
    out_t = jnp.dot(wo_t_ref[...], yt_ref[...].astype(cdt),
                    preferred_element_type=jnp.float32)              # (E, N) f32
    ot_ref[...] = (out_t + bo_ref[...]).astype(ot_ref.dtype)


def _pick_compute_dtype():
    """bf16 MXU operands on v6e/v7x; f32 on v5e / unknown chips."""
    try:
        kind = jax.devices()[0].device_kind.lower()
    except Exception:
        return jnp.float32
    if ("v6" in kind) or ("7x" in kind) or ("v7" in kind):
        return jnp.bfloat16
    return jnp.float32


def self_attention(x, w_qkv, w_out, b_out, *, num_heads, head_size,
                   compute_dtype=None):
    """x: (B, S, E) float32 -> (B, S, E) float32.

    compute_dtype is the MXU operand dtype (bf16 on v6e/v7x, f32 on v5e by
    default); accumulation and softmax are always f32.
    """
    B, S, E = x.shape
    N = B * S
    scale = 1.0 / math.sqrt(head_size)
    if compute_dtype is None:
        compute_dtype = _pick_compute_dtype()

    # Wrapper-side layout plumbing (tiny transposes / one-time weight prep):
    # merge batch*seq and transpose so per-head slices are sublane-aligned.
    x_t = x.reshape(N, E).T.astype(compute_dtype)         # (E, N)
    w_qkv_t = w_qkv.T.astype(compute_dtype)               # (3E, E)
    w_out_t = w_out.T.astype(compute_dtype)               # (E, E) = Wo^T
    b_out_t = b_out.reshape(E, 1).astype(jnp.float32)     # (E, 1)

    # Static additive block-diagonal causal mask bias, built once here instead
    # of iotas + integer divide + compares inside the kernel.  -1e30 (finite)
    # so a fully-masked row could never produce NaN.
    tok = jnp.arange(N, dtype=jnp.int32)
    same_batch = (tok[:, None] // S) == (tok[None, :] // S)
    causal = (tok[:, None] >= tok[None, :]) & same_batch
    mask_bias = jnp.where(causal, 0.0, -1e30).astype(jnp.float32)    # (N, N)

    kernel = functools.partial(
        _self_attention_kernel,
        num_heads=num_heads, head_size=head_size, scale=scale,
        compute_dtype=compute_dtype)

    vmem = pltpu.MemorySpace.VMEM
    out_t = pl.pallas_call(
        kernel,
        out_shape=jax.ShapeDtypeStruct((E, N), jnp.float32),
        in_specs=[pl.BlockSpec(memory_space=vmem) for _ in range(5)],
        out_specs=pl.BlockSpec(memory_space=vmem),
        scratch_shapes=[pltpu.VMEM((E, N), jnp.float32)],
    )(x_t, w_qkv_t, w_out_t, b_out_t, mask_bias)

    return out_t.T.reshape(B, S, E).astype(x.dtype)


def self_attention_reference(x, w_qkv, w_out, b_out, *, num_heads, head_size):
    """Pure-JAX f32 reference mirroring the PyTorch forward (dropout=identity)."""
    B, S, E = x.shape
    qkv = x @ w_qkv                                           # (B, S, 3E)
    q, k, v = jnp.split(qkv, 3, axis=-1)

    def heads(t):
        return t.reshape(B, S, num_heads, head_size).transpose(0, 2, 1, 3)

    q, k, v = heads(q), heads(k), heads(v)                    # (B, H, S, D)
    att = (q @ jnp.swapaxes(k, -1, -2)) / math.sqrt(head_size)
    mask = jnp.tril(jnp.ones((S, S), dtype=bool))
    att = jnp.where(mask, att, -jnp.inf)
    att = jax.nn.softmax(att, axis=-1)
    y = att @ v                                               # (B, H, S, D)
    y = y.transpose(0, 2, 1, 3).reshape(B, S, E)
    return y @ w_out + b_out


if __name__ == "__main__":
    # Configuration: embedding_size=32, count_heads=4, head_size=8,
    # block_size=16, seq_length=8 (<= block_size), batch=2.
    batch, seq, emb = 2, 8, 32
    num_heads, head_size = 4, 8

    key = jax.random.PRNGKey(0)
    kx, kqkv, kwo, kbo = jax.random.split(key, 4)

    bound = 1.0 / math.sqrt(emb)
    x = jax.random.normal(kx, (batch, seq, emb), dtype=jnp.float32)
    w_qkv = jax.random.uniform(kqkv, (emb, 3 * emb), jnp.float32, -bound, bound)
    w_out = jax.random.uniform(kwo, (emb, emb), jnp.float32, -bound, bound)
    b_out = jax.random.uniform(kbo, (1, emb), jnp.float32, -bound, bound)

    ref = self_attention_reference(x, w_qkv, w_out, b_out,
                                   num_heads=num_heads, head_size=head_size)

    # f32-operand path (v5e default): tolerance accommodates only the EUP
    # approximate reciprocal used in the softmax normalization.
    out_f32 = self_attention(x, w_qkv, w_out, b_out,
                             num_heads=num_heads, head_size=head_size,
                             compute_dtype=jnp.float32)
    out_f32 = jax.block_until_ready(out_f32)
    assert out_f32.shape == (batch, seq, emb)
    assert jnp.allclose(out_f32, ref, atol=5e-3, rtol=5e-3), "f32 path mismatch"

    # Mixed-precision path (bf16 MXU operands, f32 accumulate + f32 softmax),
    # the default on v6e/v7x.
    out_bf16 = self_attention(x, w_qkv, w_out, b_out,
                              num_heads=num_heads, head_size=head_size,
                              compute_dtype=jnp.bfloat16)
    out_bf16 = jax.block_until_ready(out_bf16)
    assert out_bf16.shape == (batch, seq, emb)
    assert jnp.allclose(out_bf16, ref, atol=5e-2, rtol=5e-2), "bf16 path mismatch"

    # Device-default dtype path (exercises the per-chip default selection).
    out_def = self_attention(x, w_qkv, w_out, b_out,
                             num_heads=num_heads, head_size=head_size)
    out_def = jax.block_until_ready(out_def)
    assert jnp.allclose(out_def, ref, atol=5e-2, rtol=5e-2), "default path mismatch"

    print("KERNEL_OK")
</pallas_src>

<mosaic_0001>
module attributes {stable_mosaic.version = 11 : i64} {
  func.func @_self_attention_kernel(%arg0: memref<32x16xf32, #tpu.memory_space<vmem>>, %arg1: memref<96x32xf32, #tpu.memory_space<vmem>>, %arg2: memref<32x32xf32, #tpu.memory_space<vmem>>, %arg3: memref<32x1xf32, #tpu.memory_space<vmem>>, %arg4: memref<16x16xf32, #tpu.memory_space<vmem>>, %arg5: memref<32x16xf32, #tpu.memory_space<vmem>>, %arg6: memref<32x16xf32, #tpu.memory_space<vmem>>) attributes {dimension_semantics = [], scalar_prefetch = 0 : i64, scratch_operands = 1 : i64, tpu.core_type = #tpu.core_type<tc>} {
    %c0 = arith.constant 0 : index
    %c0_0 = arith.constant 0 : index
    %0 = vector.load %arg1[%c0, %c0_0] : memref<96x32xf32, #tpu.memory_space<vmem>>, vector<96x32xf32>
    %c0_1 = arith.constant 0 : index
    %c0_2 = arith.constant 0 : index
    %1 = vector.load %arg0[%c0_1, %c0_2] : memref<32x16xf32, #tpu.memory_space<vmem>>, vector<32x16xf32>
    %cst = arith.constant dense<0.000000e+00> : vector<96x16xf32>
    %2 = tpu.matmul %0, %1, %cst {dimension_numbers = #tpu.dot_dimension_numbers<[1], [0], [0], [1], [0, 0, 1, 1], [], []>} : vector<96x32xf32>, vector<32x16xf32>, vector<96x16xf32> -> vector<96x16xf32>
    %c0_3 = arith.constant 0 : index
    %c0_4 = arith.constant 0 : index
    %3 = vector.load %arg4[%c0_3, %c0_4] : memref<16x16xf32, #tpu.memory_space<vmem>>, vector<16x16xf32>
    %4 = vector.extract_strided_slice %2 {offsets = [0, 0], sizes = [8, 16], strides = [1, 1]} : vector<96x16xf32> to vector<8x16xf32>
    %cst_5 = arith.constant 0.353553385 : f32
    %5 = vector.broadcast %cst_5 : f32 to vector<8x16xf32>
    %6 = arith.mulf %4, %5 : vector<8x16xf32>
    %7 = vector.extract_strided_slice %2 {offsets = [32, 0], sizes = [8, 16], strides = [1, 1]} : vector<96x16xf32> to vector<8x16xf32>
    %8 = vector.extract_strided_slice %2 {offsets = [64, 0], sizes = [8, 16], strides = [1, 1]} : vector<96x16xf32> to vector<8x16xf32>
    %cst_6 = arith.constant dense<0.000000e+00> : vector<16x16xf32>
    %9 = tpu.matmul %6, %7, %cst_6 {dimension_numbers = #tpu.dot_dimension_numbers<[0], [0], [1], [1], [0, 1, 1, 1], [], []>} : vector<8x16xf32>, vector<8x16xf32>, vector<16x16xf32> -> vector<16x16xf32>
    %10 = arith.addf %9, %3 : vector<16x16xf32>
    %cst_7 = arith.constant dense<0xFF800000> : vector<16xf32>
    %11 = vector.multi_reduction <maximumf>, %10, %cst_7 [1] : vector<16x16xf32> to vector<16xf32>
    %12 = vector.shape_cast %11 : vector<16xf32> to vector<16x1xf32>
    %13 = vector.broadcast %12 : vector<16x1xf32> to vector<16x16xf32>
    %14 = arith.subf %10, %13 : vector<16x16xf32>
    %15 = math.exp %14 : vector<16x16xf32>
    %cst_8 = arith.constant dense<0.000000e+00> : vector<16xf32>
    %16 = vector.multi_reduction <add>, %15, %cst_8 [1] : vector<16x16xf32> to vector<16xf32>
    %17 = vector.shape_cast %16 : vector<16xf32> to vector<16x1xf32>
    %18 = tpu.reciprocal %17 {approx = true} : vector<16x1xf32> -> vector<16x1xf32>
    %19 = vector.broadcast %18 : vector<16x1xf32> to vector<16x16xf32>
    %20 = arith.mulf %15, %19 : vector<16x16xf32>
    %cst_9 = arith.constant dense<0.000000e+00> : vector<8x16xf32>
    %21 = tpu.matmul %8, %20, %cst_9 {dimension_numbers = #tpu.dot_dimension_numbers<[1], [1], [0], [0], [0, 0, 1, 0], [], []>} : vector<8x16xf32>, vector<16x16xf32>, vector<8x16xf32> -> vector<8x16xf32>
    %c0_10 = arith.constant 0 : index
    %c0_11 = arith.constant 0 : index
    %22 = vector.load %arg6[%c0_10, %c0_11] : memref<32x16xf32, #tpu.memory_space<vmem>>, vector<8x16xf32>
    tpu.vector_store %arg6[%c0_10, %c0_11], %21 {strides = array<i32>} : memref<32x16xf32, #tpu.memory_space<vmem>>, vector<8x16xf32>,
    %23 = vector.extract_strided_slice %2 {offsets = [8, 0], sizes = [8, 16], strides = [1, 1]} : vector<96x16xf32> to vector<8x16xf32>
    %cst_12 = arith.constant 0.353553385 : f32
    %24 = vector.broadcast %cst_12 : f32 to vector<8x16xf32>
    %25 = arith.mulf %23, %24 : vector<8x16xf32>
    %26 = vector.extract_strided_slice %2 {offsets = [40, 0], sizes = [8, 16], strides = [1, 1]} : vector<96x16xf32> to vector<8x16xf32>
    %27 = vector.extract_strided_slice %2 {offsets = [72, 0], sizes = [8, 16], strides = [1, 1]} : vector<96x16xf32> to vector<8x16xf32>
    %cst_13 = arith.constant dense<0.000000e+00> : vector<16x16xf32>
    %28 = tpu.matmul %25, %26, %cst_13 {dimension_numbers = #tpu.dot_dimension_numbers<[0], [0], [1], [1], [0, 1, 1, 1], [], []>} : vector<8x16xf32>, vector<8x16xf32>, vector<16x16xf32> -> vector<16x16xf32>
    %29 = arith.addf %28, %3 : vector<16x16xf32>
    %cst_14 = arith.constant dense<0xFF800000> : vector<16xf32>
    %30 = vector.multi_reduction <maximumf>, %29, %cst_14 [1] : vector<16x16xf32> to vector<16xf32>
    %31 = vector.shape_cast %30 : vector<16xf32> to vector<16x1xf32>
    %32 = vector.broadcast %31 : vector<16x1xf32> to vector<16x16xf32>
    %33 = arith.subf %29, %32 : vector<16x16xf32>
    %34 = math.exp %33 : vector<16x16xf32>
    %cst_15 = arith.constant dense<0.000000e+00> : vector<16xf32>
    %35 = vector.multi_reduction <add>, %34, %cst_15 [1] : vector<16x16xf32> to vector<16xf32>
    %36 = vector.shape_cast %35 : vector<16xf32> to vector<16x1xf32>
    %37 = tpu.reciprocal %36 {approx = true} : vector<16x1xf32> -> vector<16x1xf32>
    %38 = vector.broadcast %37 : vector<16x1xf32> to vector<16x16xf32>
    %39 = arith.mulf %34, %38 : vector<16x16xf32>
    %cst_16 = arith.constant dense<0.000000e+00> : vector<8x16xf32>
    %40 = tpu.matmul %27, %39, %cst_16 {dimension_numbers = #tpu.dot_dimension_numbers<[1], [1], [0], [0], [0, 0, 1, 0], [], []>} : vector<8x16xf32>, vector<16x16xf32>, vector<8x16xf32> -> vector<8x16xf32>
    %c8 = arith.constant 8 : index
    %c0_17 = arith.constant 0 : index
    %41 = vector.load %arg6[%c8, %c0_17] : memref<32x16xf32, #tpu.memory_space<vmem>>, vector<8x16xf32>
    tpu.vector_store %arg6[%c8, %c0_17], %40 {strides = array<i32>} : memref<32x16xf32, #tpu.memory_space<vmem>>, vector<8x16xf32>,
    %42 = vector.extract_strided_slice %2 {offsets = [16, 0], sizes = [8, 16], strides = [1, 1]} : vector<96x16xf32> to vector<8x16xf32>
    %cst_18 = arith.constant 0.353553385 : f32
    %43 = vector.broadcast %cst_18 : f32 to vector<8x16xf32>
    %44 = arith.mulf %42, %43 : vector<8x16xf32>
    %45 = vector.extract_strided_slice %2 {offsets = [48, 0], sizes = [8, 16], strides = [1, 1]} : vector<96x16xf32> to vector<8x16xf32>
    %46 = vector.extract_strided_slice %2 {offsets = [80, 0], sizes = [8, 16], strides = [1, 1]} : vector<96x16xf32> to vector<8x16xf32>
    %cst_19 = arith.constant dense<0.000000e+00> : vector<16x16xf32>
    %47 = tpu.matmul %44, %45, %cst_19 {dimension_numbers = #tpu.dot_dimension_numbers<[0], [0], [1], [1], [0, 1, 1, 1], [], []>} : vector<8x16xf32>, vector<8x16xf32>, vector<16x16xf32> -> vector<16x16xf32>
    %48 = arith.addf %47, %3 : vector<16x16xf32>
    %cst_20 = arith.constant dense<0xFF800000> : vector<16xf32>
    %49 = vector.multi_reduction <maximumf>, %48, %cst_20 [1] : vector<16x16xf32> to vector<16xf32>
    %50 = vector.shape_cast %49 : vector<16xf32> to vector<16x1xf32>
    %51 = vector.broadcast %50 : vector<16x1xf32> to vector<16x16xf32>
    %52 = arith.subf %48, %51 : vector<16x16xf32>
    %53 = math.exp %52 : vector<16x16xf32>
    %cst_21 = arith.constant dense<0.000000e+00> : vector<16xf32>
    %54 = vector.multi_reduction <add>, %53, %cst_21 [1] : vector<16x16xf32> to vector<16xf32>
    %55 = vector.shape_cast %54 : vector<16xf32> to vector<16x1xf32>
    %56 = tpu.reciprocal %55 {approx = true} : vector<16x1xf32> -> vector<16x1xf32>
    %57 = vector.broadcast %56 : vector<16x1xf32> to vector<16x16xf32>
    %58 = arith.mulf %53, %57 : vector<16x16xf32>
    %cst_22 = arith.constant dense<0.000000e+00> : vector<8x16xf32>
    %59 = tpu.matmul %46, %58, %cst_22 {dimension_numbers = #tpu.dot_dimension_numbers<[1], [1], [0], [0], [0, 0, 1, 0], [], []>} : vector<8x16xf32>, vector<16x16xf32>, vector<8x16xf32> -> vector<8x16xf32>
    %c16 = arith.constant 16 : index
    %c0_23 = arith.constant 0 : index
    %60 = vector.load %arg6[%c16, %c0_23] : memref<32x16xf32, #tpu.memory_space<vmem>>, vector<8x16xf32>
    tpu.vector_store %arg6[%c16, %c0_23], %59 {strides = array<i32>} : memref<32x16xf32, #tpu.memory_space<vmem>>, vector<8x16xf32>,
    %61 = vector.extract_strided_slice %2 {offsets = [24, 0], sizes = [8, 16], strides = [1, 1]} : vector<96x16xf32> to vector<8x16xf32>
    %cst_24 = arith.constant 0.353553385 : f32
    %62 = vector.broadcast %cst_24 : f32 to vector<8x16xf32>
    %63 = arith.mulf %61, %62 : vector<8x16xf32>
    %64 = vector.extract_strided_slice %2 {offsets = [56, 0], sizes = [8, 16], strides = [1, 1]} : vector<96x16xf32> to vector<8x16xf32>
    %65 = vector.extract_strided_slice %2 {offsets = [88, 0], sizes = [8, 16], strides = [1, 1]} : vector<96x16xf32> to vector<8x16xf32>
    %cst_25 = arith.constant dense<0.000000e+00> : vector<16x16xf32>
    %66 = tpu.matmul %63, %64, %cst_25 {dimension_numbers = #tpu.dot_dimension_numbers<[0], [0], [1], [1], [0, 1, 1, 1], [], []>} : vector<8x16xf32>, vector<8x16xf32>, vector<16x16xf32> -> vector<16x16xf32>
    %67 = arith.addf %66, %3 : vector<16x16xf32>
    %cst_26 = arith.constant dense<0xFF800000> : vector<16xf32>
    %68 = vector.multi_reduction <maximumf>, %67, %cst_26 [1] : vector<16x16xf32> to vector<16xf32>
    %69 = vector.shape_cast %68 : vector<16xf32> to vector<16x1xf32>
    %70 = vector.broadcast %69 : vector<16x1xf32> to vector<16x16xf32>
    %71 = arith.subf %67, %70 : vector<16x16xf32>
    %72 = math.exp %71 : vector<16x16xf32>
    %cst_27 = arith.constant dense<0.000000e+00> : vector<16xf32>
    %73 = vector.multi_reduction <add>, %72, %cst_27 [1] : vector<16x16xf32> to vector<16xf32>
    %74 = vector.shape_cast %73 : vector<16xf32> to vector<16x1xf32>
    %75 = tpu.reciprocal %74 {approx = true} : vector<16x1xf32> -> vector<16x1xf32>
    %76 = vector.broadcast %75 : vector<16x1xf32> to vector<16x16xf32>
    %77 = arith.mulf %72, %76 : vector<16x16xf32>
    %cst_28 = arith.constant dense<0.000000e+00> : vector<8x16xf32>
    %78 = tpu.matmul %65, %77, %cst_28 {dimension_numbers = #tpu.dot_dimension_numbers<[1], [1], [0], [0], [0, 0, 1, 0], [], []>} : vector<8x16xf32>, vector<16x16xf32>, vector<8x16xf32> -> vector<8x16xf32>
    %c24 = arith.constant 24 : index
    %c0_29 = arith.constant 0 : index
    %79 = vector.load %arg6[%c24, %c0_29] : memref<32x16xf32, #tpu.memory_space<vmem>>, vector<8x16xf32>
    tpu.vector_store %arg6[%c24, %c0_29], %78 {strides = array<i32>} : memref<32x16xf32, #tpu.memory_space<vmem>>, vector<8x16xf32>,
    %c0_30 = arith.constant 0 : index
    %c0_31 = arith.constant 0 : index
    %80 = vector.load %arg2[%c0_30, %c0_31] : memref<32x32xf32, #tpu.memory_space<vmem>>, vector<32x32xf32>
    %c0_32 = arith.constant 0 : index
    %c0_33 = arith.constant 0 : index
    %81 = vector.load %arg6[%c0_32, %c0_33] : memref<32x16xf32, #tpu.memory_space<vmem>>, vector<32x16xf32>
    %cst_34 = arith.constant dense<0.000000e+00> : vector<32x16xf32>
    %82 = tpu.matmul %80, %81, %cst_34 {dimension_numbers = #tpu.dot_dimension_numbers<[1], [0], [0], [1], [0, 0, 1, 1], [], []>} : vector<32x32xf32>, vector<32x16xf32>, vector<32x16xf32> -> vector<32x16xf32>
    %c0_35 = arith.constant 0 : index
    %c0_36 = arith.constant 0 : index
    %83 = vector.load %arg3[%c0_35, %c0_36] : memref<32x1xf32, #tpu.memory_space<vmem>>, vector<32x1xf32>
    %84 = vector.broadcast %83 : vector<32x1xf32> to vector<32x16xf32>
    %85 = arith.addf %82, %84 : vector<32x16xf32>
    %c0_37 = arith.constant 0 : index
    %c0_38 = arith.constant 0 : index
    %86 = vector.load %arg5[%c0_37, %c0_38] : memref<32x16xf32, #tpu.memory_space<vmem>>, vector<32x16xf32>
    tpu.vector_store %arg5[%c0_37, %c0_38], %85 {strides = array<i32>} : memref<32x16xf32, #tpu.memory_space<vmem>>, vector<32x16xf32>,
    return
  }
}

</mosaic_0001>

<bundles_post_ra>
// kernel: tpu_custom_call.1
= control target key start
LH: loop header
LB: loop body
LE: loop exit
PB: predicated region body
PF: predicated region fallthrough
CT: control target
= control target key end

     0   :  { %vm36_vm0 = vcmask 261120   ;;  %vm233_vm1 = vcmask 64512   ;;  %vm315_vm2 = vcmask 130048   ;;  %v1445_v43 = vmov 0.0|0.0   ;;  %s1680_s0 = inlined_call_operand.vmem [shape: f32[32,16], index: 0, kind: input, shape index: {}]   ;;  %s1681_s1 = inlined_call_operand.vmem [shape: f32[96,32], index: 1, kind: input, shape index: {}]   ;;  %s1682_s4 = inlined_call_operand.vmem [shape: f32[16,16], index: 4, kind: input, shape index: {}]   ;;  %s1683_s2 = inlined_call_operand.vmem [shape: f32[32,32], index: 2, kind: input, shape index: {}]   ;;  %s1684_s3 = inlined_call_operand.vmem [shape: f32[32,1], index: 3, kind: input, shape index: {}]   ;;  %s1685_s5 = inlined_call_operand.vmem [shape: f32[32,16], index: 5, kind: output, shape index: {}]  }
   0x1   :  { %v32_v0 = vld [vmem:[%s1680_s0] sm:$0xff]  ;;  %v33_v1 = vld [vmem:[%s1680_s0 + $0x8] sm:$0xff]  ;;  %v34_v2 = vld [vmem:[%s1680_s0 + $0x10] sm:$0xff]  ;;  %vm1446_vm3 = vmmov 0   ;;  %v1447_v46 = vmov 0.0  }
   0x2   :  { %v1375_v3 = vpack.c.bf16 %v33_v1, %v32_v0  ;;  %v35_v4 = vld [vmem:[%s1680_s0 + $0x18] sm:$0xff]  ;;  %v20_v5 = vld [vmem:[%s1681_s1] sm:$0xff]  ;;  %v21_v7 = vld [vmem:[%s1681_s1 + $0x8] sm:$0xff] }
   0x3   :  { %v1379_v6 = vpack.c.bf16 %v35_v4, %v34_v2  ;;  %1295 = vmatprep.mubr.msk.f32.mxu0 %vm36_vm0, %v20_v5  ;;  %v22_v8 = vld [vmem:[%s1681_s1 + $0x10] sm:$0xff]  ;;  %v23_v9 = vld [vmem:[%s1681_s1 + $0x18] sm:$0xff]  ;;  %v24_v10 = vld [vmem:[%s1681_s1 + $0x20] sm:$0xff] }
   0x4   :  { %1376 = vmatprep.subr.bf16.mxu0 %v1375_v3  ;;  %v25_v11 = vld [vmem:[%s1681_s1 + $0x28] sm:$0xff]  ;;  %v26_v21 = vld [vmem:[%s1681_s1 + $0x30] sm:$0xff]  ;;  %v27_v22 = vld [vmem:[%s1681_s1 + $0x38] sm:$0xff] }
   0x5   :  { %1378 = vmatpush3.bf16.msra.mxu0 %v1375_v3  ;;  %v28_v23 = vld [vmem:[%s1681_s1 + $0x40] sm:$0xff]  ;;  %v29_v24 = vld [vmem:[%s1681_s1 + $0x48] sm:$0xff]  ;;  %vm1567_vm4 = vmpackc.low %vm315_vm2, %vm315_vm2 }
   0x6   :  { %1380 = vmatprep.subr.bf16.mxu0 %v1379_v6  ;;  %v1542_v25 = vld [vmem:[%s1682_s4 + $0x8] sm:$0xff]  ;;  %v1547_v26 = vld [vmem:[%s1682_s4] sm:$0xff] }
   0x7   :  { %v1074_v56 = vld [vmem:[%s1684_s3] sm:$0xff] }
   0x9   :  { %1382 = vmatpush3.bf16.msra.mxu0 %v1379_v6 }
   0xa   :  { %1391 = vmatprep.subr.bf16.mxu0 %v1445_v43 }
   0xc   :  { %1296 = vmatmul.mubr.msk.f32.vlgmr.msra.gmra.mrb[0].mxu0 %vm36_vm0, %v21_v7 }
   0xd   :  { %1298 = vmatprep.mubr.msk.f32.mxu0 %vm36_vm0, %v22_v8 }
  0x10   :  { %1299 = vmatmul.mubr.msk.f32.gmra.mrb[2].mxu0 %vm36_vm0, %v23_v9 }
  0x11   :  { %1301 = vmatprep.mubr.msk.f32.mxu0 %vm36_vm0, %v24_v10 }
  0x14   :  { %1302 = vmatmul.mubr.msk.f32.gmra.mrb[4].mxu0 %vm36_vm0, %v25_v11 }
  0x15   :  { %1304 = vmatprep.mubr.msk.f32.mxu0 %vm36_vm0, %v26_v21 }
  0x18   :  { %1305 = vmatmul.mubr.msk.f32.gmra.mrb[6].mxu0 %vm36_vm0, %v27_v22 }
  0x19   :  { %1307 = vmatprep.mubr.msk.f32.mxu0 %vm36_vm0, %v28_v23 }
  0x1c   :  { %1308 = vmatmul.mubr.msk.f32.gmra.mrb[8].mxu0 %vm36_vm0, %v29_v24 }
  0xdf   :  { %v1297_v12 = vpop.f32.mrb[0].mxu0 }
  0xe0   :  { %v139_v13 = vpop.f32.mrb[1].mxu0  ;;  %v418_v49 = vmul.f32 0.35355338, %v1297_v12 }
  0xe1   :  { %v200_v14 = vmul.f32 0.35355338, %v139_v13 }
  0xe3   :  { %201 = vxpose.xlu0.b32.start.end [1/1] (short) (narrow) %v200_v14, 16  ;;  %v1515_v15 = vpop.f32.mrb[2].mxu0 }
  0xe4   :  { %v1517_v16 = vpop.f32.mrb[3].mxu0 }
  0xe5   :  { %v634_v14 = vmul.f32 0.35355338, %v1517_v16 }
  0xe7   :  { %v1519_v17 = vpop.f32.mrb[4].mxu0 }
  0xe8   :  { %v159_v18 = vpop.f32.mrb[5].mxu0 }
  0xe9   :  { %1313 = vmatprep.subr.mxu1 %v159_v18 }
  0xea   :  { %1314 = vmatpush3.msra.mxu1 %v159_v18 }
  0xeb   :  { %1383 = vmatprep.subr.bf16.mxu1 %v1445_v43  ;;  %v1557_v44 = vpop.f32.mrb[6].mxu0 }
  0xec   :  { %v1559_v45 = vpop.f32.mrb[7].mxu0 }
  0xef   :  { %v1563_v47 = vpop.f32.mrb[8].mxu0 }
  0xf0   :  { %v179_v48 = vpop.f32.mrb[9].mxu0 }
 0x163   :  { %v217_v19 = vpop.trf.xlu0 }
 0x164   :  { %1315 = vmatprep.mubr.msk.f32.mxu1 %vm233_vm1, %v217_v19 }
 0x167   :  { %v218_v20 = vpop.trf.xlu0 }
 0x168   :  { %1316 = vmatmul.mubr.msk.f32.vlgmr.msra.gmra.mrb[0].mxu1 %vm233_vm1, %v218_v20 }
 0x169   :  { %1322 = vmatprep.mubr.msk.f32.mxu1 %vm1446_vm3, %v1447_v46 }
 0x23b   :  { %v1317_v27 = vpop.f32.mrb[0].mxu1 }
 0x23c   :  { %v312_v28 = vadd.f32 %v1317_v27, %v1542_v25  ;;  %v306_v29 = vpop.f32.mrb[1].mxu1 }
 0x23d   :  { %v307_v30 = vadd.f32 %v306_v29, %v1547_v26  ;;  %v30_v29 = vld [vmem:[%s1681_s1 + $0x50] sm:$0xff] }
 0x23e   :  { %v319_v31 = vsel %vm315_vm2, %v312_v28, -inf  ;;  %1310 = vmatprep.mubr.msk.f32.mxu0 %vm36_vm0, %v30_v29 }
 0x23f   :  { %320 = vmax.xlane.f32.xlu1 %v319_v31  ;;  %v316_v32 = vsel %vm315_vm2, %v307_v30, -inf }
 0x240   :  { %317 = vmax.xlane.f32.xlu0 %v316_v32 }
 0x2cc   :  { %v321_v33 = vpop.xlane.xlu1 %320 }
 0x2cd   :  { %v323_v34 = vsub.f32 %v312_v28, %v321_v33  ;;  %v318_v35 = vpop.xlane.xlu0 %317 }
 0x2ce   :  { %v322_v36 = vsub.f32 %v307_v30, %v318_v35  ;;  %v31_v30 = vld [vmem:[%s1681_s1 + $0x58] sm:$0xff] }
 0x2cf   :  { %v326_v37 = vmul.f32 1.442695, %v323_v34  ;;  %1311 = vmatmul.mubr.msk.f32.gmra.mrb[10].mxu0 %vm36_vm0, %v31_v30 }
 0x2d0   :  { %v324_v38 = vmul.f32 1.442695, %v322_v36  ;;  %1346 = vmatprep.mubr.msk.f32.mxu0 %vm1446_vm3, %v1447_v46 }
 0x2d2   :  { %1413 = vpow2.f32 %v324_v38 }
 0x2d3   :  { %1415 = vpow2.f32 %v326_v37 }
 0x2dc   :  { %v1414_v39 = vpop.eup %1413 }
 0x2dd   :  { %v328_v40 = vsel %vm315_vm2, %v1414_v39, 0.0  ;;  %v1416_v41 = vpop.eup %1415 }
 0x2de   :  { %329 = vadd.xlane.f32.xlu1 %v328_v40  ;;  %v331_v42 = vsel %vm315_vm2, %v1416_v41, 0.0 }
 0x2e2   :  { %332 = vadd.xlane.f32.xlu1 %v331_v42 }
 0x315   :  { %419 = vxpose.xlu1.b32.start.end [1/1] (short) (narrow) %v418_v49, 16 }
 0x36b   :  { %v330_v50 = vpop.xlane.xlu1 %329 }
 0x36c   :  { %1417 = vrcp.f32 %v330_v50 }
 0x36f   :  { %v333_v51 = vpop.xlane.xlu1 %332 }
 0x370   :  { %1419 = vrcp.f32 %v333_v51 }
 0x376   :  { %v1418_v52 = vpop.eup %1417 }
 0x377   :  { %v336_v54 = vmul.f32 %v1418_v52, %v1414_v39 }
 0x37a   :  { %v1420_v53 = vpop.eup %1419 }
 0x37b   :  { %v337_v55 = vmul.f32 %v1420_v53, %v1416_v41 }
 0x37d   :  { %v1384_v57 = vpack.c.bf16 %v337_v55, %v336_v54 }
 0x37f   :  { %1386 = vmatpush3.bf16.xpose.msk.msra.mxu1 %vm1567_vm4, %v1384_v57 }
 0x380   :  { %1325 = vmatprep.subr.mxu1 %v1519_v17 }
 0x386   :  { %1323 = vmatmul.mubr.msk.f32.vlgmr.msra.gmra.mrb[2].mxu1 %vm315_vm2, %v179_v48 }
 0x387   :  { %1326 = vmatpush3.msra.mxu1 %v1519_v17  ;;  %v850_v17 = vmul.f32 0.35355338, %v1515_v15 }
 0x388   :  { %1387 = vmatprep.subr.bf16.mxu1 %v1445_v43 }
 0x395   :  { %v435_v58 = vpop.trf.xlu1 }
 0x396   :  { %1327 = vmatprep.mubr.msk.f32.mxu1 %vm233_vm1, %v435_v58 }
 0x399   :  { %v436_v59 = vpop.trf.xlu1 }
 0x39a   :  { %1328 = vmatmul.mubr.msk.f32.vlgmr.msra.gmra.mrb[4].mxu1 %vm233_vm1, %v436_v59 }
 0x39b   :  { %1334 = vmatprep.mubr.msk.f32.mxu1 %vm1446_vm3, %v1447_v46 }
 0x459   :  { %v413_v60 = vpop.f32.mrb[2].mxu1 }
 0x45a   :  { %417 = vst.msk [vmem:[#allocation2] sm:$0xff] %vm315_vm2, %v413_v60  ;;  %v1324_v61 = vpop.f32.mrb[3].mxu1 }
 0x46d   :  { %v1329_v62 = vpop.f32.mrb[4].mxu1 }
 0x46e   :  { %v523_v63 = vpop.f32.mrb[5].mxu1  ;;  %v529_v1 = vadd.f32 %v1329_v62, %v1542_v25 }
 0x46f   :  { %v524_v0 = vadd.f32 %v523_v63, %v1547_v26 }
 0x470   :  { %v535_v3 = vsel %vm315_vm2, %v529_v1, -inf }
 0x471   :  { %v532_v2 = vsel %vm315_vm2, %v524_v0, -inf }
 0x472   :  { %533 = vmax.xlane.f32.xlu0 %v532_v2 }
 0x476   :  { %536 = vmax.xlane.f32.xlu0 %v535_v3 }
 0x4ff   :  { %v534_v4 = vpop.xlane.xlu0 %533 }
 0x500   :  { %v538_v5 = vsub.f32 %v524_v0, %v534_v4  ;;  %v1312_v0 = vpop.f32.mrb[10].mxu0 }
 0x502   :  { %v540_v6 = vmul.f32 1.442695, %v538_v5 }
 0x503   :  { %v537_v7 = vpop.xlane.xlu0 %536 }
 0x504   :  { %1421 = vpow2.f32 %v540_v6  ;;  %v539_v8 = vsub.f32 %v529_v1, %v537_v7  ;;  %v189_v1 = vpop.f32.mrb[11].mxu0 }
 0x506   :  { %v542_v9 = vmul.f32 1.442695, %v539_v8 }
 0x508   :  { %1423 = vpow2.f32 %v542_v9 }
 0x50e   :  { %v1422_v10 = vpop.eup %1421 }
 0x50f   :  { %v544_v11 = vsel %vm315_vm2, %v1422_v10, 0.0 }
 0x510   :  { %545 = vadd.xlane.f32.xlu0 %v544_v11 }
 0x512   :  { %v1424_v12 = vpop.eup %1423 }
 0x513   :  { %v547_v13 = vsel %vm315_vm2, %v1424_v12, 0.0 }
 0x514   :  { %548 = vadd.xlane.f32.xlu1 %v547_v13 }
 0x53d   :  { %635 = vxpose.xlu0.b32.start.end [1/1] (short) (narrow) %v634_v14, 16 }
 0x547   :  { %851 = vxpose.xlu1.b32.start.end [1/1] (short) (narrow) %v850_v17, 16 }
 0x59d   :  { %v546_v18 = vpop.xlane.xlu0 %545 }
 0x59e   :  { %1425 = vrcp.f32 %v546_v18 }
 0x5a1   :  { %v549_v19 = vpop.xlane.xlu1 %548 }
 0x5a2   :  { %1427 = vrcp.f32 %v549_v19 }
 0x5a8   :  { %v1426_v20 = vpop.eup %1425 }
 0x5a9   :  { %v552_v22 = vmul.f32 %v1426_v20, %v1422_v10 }
 0x5ac   :  { %v1428_v21 = vpop.eup %1427 }
 0x5ad   :  { %v553_v23 = vmul.f32 %v1428_v21, %v1424_v12  ;;  %v1070_v12 = vld [vmem:[#allocation2] sm:$0xff] }
 0x5ae   :  { %v1066_v21 = vld [vmem:[%s1683_s2] sm:$0xff] }
 0x5af   :  { %v1388_v24 = vpack.c.bf16 %v553_v23, %v552_v22  ;;  %v1448_v22 = vmov 0   ;;  %v1075_v23 = vld [vmem:[%s1684_s3 + $0x8] sm:$0xff] }
 0x5b0   :  { %1412 = vset.pattern.permute.xlu1 %v1448_v22  ;;  %1411 = vset.pattern.permute.xlu0 %v1448_v22 }
 0x5b1   :  { %1390 = vmatpush3.bf16.xpose.msk.msra.mxu1 %vm1567_vm4, %v1388_v24  ;;  %v1076_v24 = vld [vmem:[%s1684_s3 + $0x10] sm:$0xff] }
 0x5b2   :  { %1337 = vmatprep.subr.mxu1 %v1559_v45 }
 0x5b8   :  { %1335 = vmatmul.mubr.msk.f32.vlgmr.msra.gmra.mrb[6].mxu1 %vm315_vm2, %v1563_v47 }
 0x5b9   :  { %1338 = vmatpush3.msra.mxu1 %v1559_v45 }
 0x5ba   :  { %1349 = vmatprep.subr.mxu1 %v1557_v44 }
 0x5bd   :  { %v651_v15 = vpop.trf.xlu0 }
 0x5be   :  { %1339 = vmatprep.mubr.msk.f32.mxu1 %vm233_vm1, %v651_v15  ;;  %v1077_v15 = vld [vmem:[%s1684_s3 + $0x18] sm:$0xff] }
 0x5c1   :  { %v652_v16 = vpop.trf.xlu0 }
 0x5c2   :  { %1340 = vmatmul.mubr.msk.f32.vlgmr.msra.gmra.mrb[8].mxu1 %vm233_vm1, %v652_v16 }
 0x5c3   :  { %1350 = vmatpush3.msra.mxu1 %v1557_v44 }
 0x5c4   :  { %1395 = vmatprep.subr.bf16.mxu1 %v1445_v43 }
 0x5c7   :  { %v867_v27 = vpop.trf.xlu1 }
 0x5c8   :  { %1351 = vmatprep.mubr.msk.f32.mxu1 %vm233_vm1, %v867_v27 }
 0x5cb   :  { %v868_v28 = vpop.trf.xlu1 }
 0x5cc   :  { %1352 = vmatmul.mubr.msk.f32.vlgmr.msra.gmra.mrb[10].mxu1 %vm233_vm1, %v868_v28 }
 0x5cd   :  { %1358 = vmatprep.mubr.msk.f32.mxu1 %vm1446_vm3, %v1447_v46 }
 0x68b   :  { %v629_v31 = vpop.f32.mrb[6].mxu1 }
 0x68c   :  { %633 = vst.msk [vmem:[#allocation2 + $0x8] sm:$0xff] %vm315_vm2, %v629_v31  ;;  %v1336_v32 = vpop.f32.mrb[7].mxu1 }
 0x693   :  { %v1071_v10 = vld [vmem:[#allocation2 + $0x8] sm:$0xff] }
 0x694   :  { %v1399_v13 = vpack.c.bf16 %v1071_v10, %v1070_v12 }
 0x695   :  { %v1341_v33 = vpop.f32.mrb[8].mxu1 }
 0x696   :  { %v745_v34 = vadd.f32 %v1341_v33, %v1542_v25  ;;  %v739_v35 = vpop.f32.mrb[9].mxu1  ;;  %v1067_v33 = vld [vmem:[%s1683_s2 + $0x8] sm:$0xff] }
 0x697   :  { %v740_v36 = vadd.f32 %v739_v35, %v1547_v26  ;;  %v1069_v35 = vld [vmem:[%s1683_s2 + $0x18] sm:$0xff] }
 0x698   :  { %v751_v37 = vsel %vm315_vm2, %v745_v34, -inf }
 0x699   :  { %752 = vmax.xlane.f32.xlu1 %v751_v37  ;;  %v748_v38 = vsel %vm315_vm2, %v740_v36, -inf }
 0x69a   :  { %749 = vmax.xlane.f32.xlu0 %v748_v38 }
 0x69f   :  { %v1353_v39 = vpop.f32.mrb[10].mxu1 }
 0x6a0   :  { %v955_v40 = vpop.f32.mrb[11].mxu1  ;;  %v961_v42 = vadd.f32 %v1353_v39, %v1542_v25 }
 0x6a1   :  { %v956_v41 = vadd.f32 %v955_v40, %v1547_v26 }
 0x6a2   :  { %v967_v44 = vsel %vm315_vm2, %v961_v42, -inf }
 0x6a3   :  { %v964_v43 = vsel %vm315_vm2, %v956_v41, -inf }
 0x6a4   :  { %965 = vmax.xlane.f32.xlu0 %v964_v43 }
 0x6a8   :  { %968 = vmax.xlane.f32.xlu0 %v967_v44 }
 0x6aa   :  { %1085 = vperm.xlu1 %1412, %v1075_v23  }
 0x6ae   :  { %1090 = vperm.xlu1 %1412, %v1076_v24  }
 0x6b2   :  { %1095 = vperm.xlu1 %1412, %v1077_v15  }
 0x726   :  { %v753_v45 = vpop.xlane.xlu1 %752 }
 0x727   :  { %v755_v46 = vsub.f32 %v745_v34, %v753_v45  ;;  %v750_v47 = vpop.xlane.xlu0 %749  ;;  %v1068_v34 = vld [vmem:[%s1683_s2 + $0x10] sm:$0xff] }
 0x728   :  { %v754_v48 = vsub.f32 %v740_v36, %v750_v47 }
 0x729   :  { %v758_v49 = vmul.f32 1.442695, %v755_v46 }
 0x72a   :  { %v756_v50 = vmul.f32 1.442695, %v754_v48  ;;  %v1086_v36 = vpop.permute.xlu1 %1085 }
 0x72b   :  { %1429 = vpow2.f32 %v758_v49 }
 0x72c   :  { %1431 = vpow2.f32 %v756_v50 }
 0x72e   :  { %v1091_v37 = vpop.permute.xlu1 %1090 }
 0x731   :  { %v966_v51 = vpop.xlane.xlu0 %965 }
 0x732   :  { %v970_v52 = vsub.f32 %v956_v41, %v966_v51  ;;  %v1096_v43 = vpop.permute.xlu1 %1095 }
 0x734   :  { %v972_v53 = vmul.f32 1.442695, %v970_v52 }
 0x735   :  { %v1430_v26 = vpop.eup %1429  ;;  %v969_v54 = vpop.xlane.xlu0 %968 }
 0x736   :  { %1433 = vpow2.f32 %v972_v53  ;;  %v971_v25 = vsub.f32 %v961_v42, %v969_v54  ;;  %v763_v55 = vsel %vm315_vm2, %v1430_v26, 0.0  ;;  %v1432_v57 = vpop.eup %1431 }
 0x737   :  { %764 = vadd.xlane.f32.xlu0 %v763_v55  ;;  %v760_v59 = vsel %vm315_vm2, %v1432_v57, 0.0 }
 0x738   :  { %v974_v58 = vmul.f32 1.442695, %v971_v25 }
 0x73a   :  { %1435 = vpow2.f32 %v974_v58 }
 0x73b   :  { %761 = vadd.xlane.f32.xlu0 %v760_v59 }
 0x740   :  { %v1434_v60 = vpop.eup %1433 }
 0x741   :  { %v976_v61 = vsel %vm315_vm2, %v1434_v60, 0.0 }
 0x742   :  { %977 = vadd.xlane.f32.xlu0 %v976_v61 }
 0x744   :  { %v1436_v62 = vpop.eup %1435 }
 0x745   :  { %v979_v63 = vsel %vm315_vm2, %v1436_v62, 0.0 }
 0x746   :  { %980 = vadd.xlane.f32.xlu0 %v979_v63 }
 0x75c   :  { %1080 = vperm.xlu0 %1411, %v1074_v56  }
 0x7c4   :  { %v765_v2 = vpop.xlane.xlu0 %764 }
 0x7c5   :  { %1437 = vrcp.f32 %v765_v2 }
 0x7c8   :  { %v762_v3 = vpop.xlane.xlu0 %761 }
 0x7c9   :  { %1439 = vrcp.f32 %v762_v3 }
 0x7cf   :  { %v978_v4 = vpop.xlane.xlu0 %977  ;;  %v1438_v5 = vpop.eup %1437 }
 0x7d0   :  { %1441 = vrcp.f32 %v978_v4  ;;  %v769_v8 = vmul.f32 %v1438_v5, %v1430_v26 }
 0x7d3   :  { %v1440_v6 = vpop.eup %1439  ;;  %v981_v7 = vpop.xlane.xlu0 %980 }
 0x7d4   :  { %v768_v9 = vmul.f32 %v1440_v6, %v1432_v57  ;;  %1443 = vrcp.f32 %v981_v7 }
 0x7d6   :  { %v1392_v11 = vpack.c.bf16 %v769_v8, %v768_v9 }
 0x7d8   :  { %1394 = vmatpush3.bf16.xpose.msk.msra.mxu0 %vm1567_vm4, %v1392_v11 }
 0x7d9   :  { %1400 = vmatprep.subr.bf16.mxu0 %v1399_v13 }
 0x7da   :  { %v1442_v14 = vpop.eup %1441 }
 0x7db   :  { %v984_v18 = vmul.f32 %v1442_v14, %v1434_v60  ;;  %v1081_v38 = vpop.permute.xlu0 %1080 }
 0x7de   :  { %v1444_v17 = vpop.eup %1443 }
 0x7df   :  { %v985_v19 = vmul.f32 %v1444_v17, %v1436_v62  ;;  %1347 = vmatmul.mubr.msk.f32.vlgmr.msra.gmra.mrb[12].mxu0 %vm315_vm2, %v189_v1 }
 0x7e0   :  { %1402 = vmatpush3.bf16.msra.mxu0 %v1399_v13  ;;  %1369 = vmatprep.mubr.msk.f32.mxu0 %vm36_vm0, %v1066_v21 }
 0x7e1   :  { %v1396_v20 = vpack.c.bf16 %v985_v19, %v984_v18 }
 0x7e3   :  { %1398 = vmatpush3.bf16.xpose.msk.msra.mxu1 %vm1567_vm4, %v1396_v20 }
 0x7ea   :  { %1359 = vmatmul.mubr.msk.f32.vlgmr.msra.gmra.mrb[12].mxu1 %vm315_vm2, %v1312_v0 }
 0x8b2   :  { %v845_v16 = vpop.f32.mrb[12].mxu0 }
 0x8b3   :  { %849 = vst.msk [vmem:[#allocation2 + $0x10] sm:$0xff] %vm315_vm2, %v845_v16  ;;  %v1348_v27 = vpop.f32.mrb[13].mxu0 }
 0x8ba   :  { %v1072_v30 = vld [vmem:[#allocation2 + $0x10] sm:$0xff] }
 0x8bd   :  { %v1061_v28 = vpop.f32.mrb[12].mxu1 }
 0x8be   :  { %1065 = vst.msk [vmem:[#allocation2 + $0x18] sm:$0xff] %vm315_vm2, %v1061_v28  ;;  %v1360_v29 = vpop.f32.mrb[13].mxu1 }
 0x8c5   :  { %v1073_v31 = vld [vmem:[#allocation2 + $0x18] sm:$0xff] }
 0x8c6   :  { %v1403_v32 = vpack.c.bf16 %v1073_v31, %v1072_v30 }
 0x8c8   :  { %1404 = vmatprep.subr.bf16.mxu0 %v1403_v32 }
 0x8c9   :  { %1406 = vmatpush3.bf16.msra.mxu0 %v1403_v32 }
 0x8cc   :  { %1370 = vmatmul.mubr.msk.f32.vlgmr.msra.gmra.mrb[14].mxu0 %vm36_vm0, %v1067_v33 }
 0x8cd   :  { %1372 = vmatprep.mubr.msk.f32.mxu0 %vm36_vm0, %v1068_v34 }
 0x8d0   :  { %1373 = vmatmul.mubr.msk.f32.gmra.mrb[16].mxu0 %vm36_vm0, %v1069_v35 }
 0x99f   :  { %v1371_v39 = vpop.f32.mrb[14].mxu0 }
 0x9a0   :  { %v1182_v40 = vadd.f32 %v1371_v39, %v1086_v36  ;;  %v1176_v41 = vpop.f32.mrb[15].mxu0 }
 0x9a1   :  { %v1177_v42 = vadd.f32 %v1176_v41, %v1081_v38 }
 0x9a2   :  { %1196 = vst.msk [vmem:[%s1685_s5 + $0x8] sm:$0xff] %vm315_vm2, %v1182_v40 }
 0x9a3   :  { %v1374_v44 = vpop.f32.mrb[16].mxu0  ;;  %1195 = vst.msk [vmem:[%s1685_s5] sm:$0xff] %vm315_vm2, %v1177_v42 }
 0x9a4   :  { %v1192_v45 = vadd.f32 %v1374_v44, %v1096_v43  ;;  %v1186_v46 = vpop.f32.mrb[17].mxu0 }
 0x9a5   :  { %v1187_v47 = vadd.f32 %v1186_v46, %v1091_v37 }
 0x9a6   :  { %1198 = vst.msk [vmem:[%s1685_s5 + $0x18] sm:$0xff] %vm315_vm2, %v1192_v45 }
 0x9a7   :  { %1197 = vst.msk [vmem:[%s1685_s5 + $0x10] sm:$0xff] %vm315_vm2, %v1187_v47 }

</bundles_post_ra>
